<compile_context>
chip_gen: v5e
topology: v5e:2x2
jax: 0.10.0
libtpu: 0.0.40
codegen_flags: <defaults>
</compile_context>

<pallas_src>
import functools

import jax
import jax.numpy as jnp
from jax.experimental import pallas as pl
from jax.experimental.pallas import tpu as pltpu

_MIB = 1024 * 1024


# ---------------------------------------------------------------------------
# helpers
# ---------------------------------------------------------------------------
def _round_up(x, m):
    return ((x + m - 1) // m) * m


def _vmem_capacity_bytes():
    """Physical VMEM per TensorCore (128 MiB v5e/v6e, 64 MiB v7x)."""
    try:
        cap = getattr(pltpu.get_tpu_info(), "vmem_capacity_bytes", None)
        if cap:
            return int(cap)
    except Exception:
        pass
    return 64 * _MIB                      # conservative default (v7x-sized)


def _vmem_limit_bytes():
    """Scoped VMEM limit requested from Mosaic (leave headroom for internals)."""
    cap = _vmem_capacity_bytes()
    return max(32 * _MIB, min(int(cap * 0.80), cap - 8 * _MIB))


def _row_tile(b, block_rows=512):
    """Batch-row tile: multiple of 16; for B>16 keep >=2 grid steps so the
    'parallel' batch axis can megacore-shard across v7x's 2 TensorCores;
    capped at block_rows (256-512 reaches ~85% of HBM roofline on v6e)."""
    if b <= 16:
        return _round_up(max(b, 1), 16)
    half = _round_up((b + 1) // 2, 16)
    return max(16, min(block_rows, half))


def _pick_tile(dim_p, cap):
    """Largest multiple-of-128 divisor of dim_p that is <= cap (dim_p%128==0)."""
    best = min(128, dim_p)
    t = 128
    top = min(dim_p, cap)
    while t <= top:
        if dim_p % t == 0:
            best = t
        t += 128
    return best


def _pad2d(a, rows, cols):
    r, c = a.shape
    if r == rows and c == cols:
        return a
    return jnp.pad(a, ((0, rows - r), (0, cols - c)))


# ---------------------------------------------------------------------------
# Kernel 1: whole MLP fused in one pallas_call (weights VMEM-resident)
# ---------------------------------------------------------------------------
def _mlp_fused_kernel(*refs, num_layers, compute_dtype):
    """refs = [x_ref, w0, b0, ..., w_{L-1}, b_{L-1}, o_ref].

    x_ref: [TM, D0p] (compute_dtype)   w_l: [D_l_p, D_{l+1}_p] (compute_dtype)
    b_l:   [1, D_{l+1}_p] (f32)        o_ref: [TM, DLp]
    """
    x_ref = refs[0]
    o_ref = refs[1 + 2 * num_layers]

    h = x_ref[...]                              # bf16
    for l in range(num_layers):
        w_ref = refs[1 + 2 * l]
        b_ref = refs[2 + 2 * l]
        # bf16 operands on the MXU, f32 accumulation.
        y = jnp.dot(h, w_ref[...], preferred_element_type=jnp.float32)
        y = y + b_ref[...]                      # f32 bias, broadcast over rows
        if l < num_layers - 1:
            # ReLU (eval-mode dropout = identity); cast straight back to bf16
            # so the live inter-layer intermediate is half the size.
            h = jnp.maximum(y, 0.0).astype(compute_dtype)
        else:
            h = y
    o_ref[...] = h.astype(o_ref.dtype)


def mlp_fused_forward(x, padded_params, dims, padded_dims, compute_dtype,
                      *, tm, vmem_limit, out_dtype=jnp.float32):
    """x: [B, in_dim] -> [B, out_dim]; all layers in ONE Pallas kernel."""
    B, din = x.shape
    assert din == dims[0]
    num_layers = len(padded_params)
    d0p, dlp = padded_dims[0], padded_dims[-1]

    bp_rows = _round_up(B, tm)
    xp = _pad2d(x, bp_rows, d0p).astype(compute_dtype)

    in_specs = [pl.BlockSpec((tm, d0p), lambda i: (i, 0))]
    flat_inputs = [xp]
    for (wp, bpar) in padded_params:
        # Constant index_map -> same block every grid step (weights resident).
        # Budgeted at 2x in _fused_resident_bytes in case the pipeliner
        # double-buffers even constant-index blocks.
        in_specs.append(pl.BlockSpec(wp.shape, lambda i: (0, 0)))
        in_specs.append(pl.BlockSpec(bpar.shape, lambda i: (0, 0)))
        flat_inputs.extend([wp, bpar])

    kernel = functools.partial(_mlp_fused_kernel,
                               num_layers=num_layers,
                               compute_dtype=compute_dtype)

    out = pl.pallas_call(
        kernel,
        out_shape=jax.ShapeDtypeStruct((bp_rows, dlp), out_dtype),
        grid=(bp_rows // tm,),
        in_specs=in_specs,
        out_specs=pl.BlockSpec((tm, dlp), lambda i: (i, 0)),
        compiler_params=pltpu.CompilerParams(
            dimension_semantics=("parallel",),
            vmem_limit_bytes=vmem_limit,        # generation-dependent
        ),
    )(*flat_inputs)
    return out[:B, :dims[-1]]


# ---------------------------------------------------------------------------
# Kernel 2: tiled single Linear(+ReLU) -- fallback when weights exceed VMEM
# ---------------------------------------------------------------------------
def _linear_tiled_kernel(x_ref, w_ref, b_ref, o_ref, acc_ref, *, apply_relu):
    k = pl.program_id(2)

    @pl.when(k == 0)
    def _():
        acc_ref[...] = jnp.zeros_like(acc_ref)

    acc_ref[...] += jnp.dot(x_ref[...], w_ref[...],
                            preferred_element_type=jnp.float32)

    @pl.when(k == pl.num_programs(2) - 1)
    def _():
        y = acc_ref[...] + b_ref[...]           # bias only once, at finalize
        if apply_relu:
            y = jnp.maximum(y, 0.0)
        o_ref[...] = y.astype(o_ref.dtype)


def _select_mm_tiles(tm, kp, np_, in_itemsize, out_itemsize, vmem_budget):
    """Largest (tn, tk) whose double-buffered working set fits vmem_budget."""
    tn_cap, tk_cap = 512, 1024
    while True:
        tn = _pick_tile(np_, tn_cap)
        tk = _pick_tile(kp, tk_cap)
        need = (2 * tm * tk * in_itemsize       # x tiles (double-buffered)
                + 2 * tk * tn * in_itemsize     # w tiles
                + 2 * tn * 4                    # bias tiles
                + 2 * tm * tn * out_itemsize    # out tiles
                + tm * tn * 4)                  # f32 accumulator scratch
        if need <= vmem_budget or (tn_cap <= 128 and tk_cap <= 128):
            return tn, tk
        if tk_cap >= tn_cap and tk_cap > 128:
            tk_cap //= 2
        elif tn_cap > 128:
            tn_cap //= 2
        else:
            tk_cap //= 2


def pallas_linear_tiled(x_padded, w_p, b_p, *, apply_relu, out_dtype, tm,
                        vmem_limit):
    """x_padded: [Bp, Kp] (already padded/cast); w_p: [Kp, Np]; b_p: [1, Np].
    Returns the PADDED output [Bp, Np] (padded cols are exact zeros/bias-free
    only after the final slice, but zero-padded K contributes nothing)."""
    bp_rows, kp = x_padded.shape
    kp_w, np_ = w_p.shape
    assert kp == kp_w and bp_rows % tm == 0

    tn, tk = _select_mm_tiles(
        tm, kp, np_,
        in_itemsize=jnp.dtype(x_padded.dtype).itemsize,
        out_itemsize=jnp.dtype(out_dtype).itemsize,
        vmem_budget=max(8 * _MIB, vmem_limit - 4 * _MIB))
    grid = (bp_rows // tm, np_ // tn, kp // tk)

    # TODO(synk): if profiling shows exposed weight DMA on v7x, deepen the w
    #             spec with pipeline_mode=pl.Buffered(3).
    return pl.pallas_call(
        functools.partial(_linear_tiled_kernel, apply_relu=apply_relu),
        out_shape=jax.ShapeDtypeStruct((bp_rows, np_), out_dtype),
        grid=grid,
        in_specs=[
            pl.BlockSpec((tm, tk), lambda i, j, k: (i, k)),
            pl.BlockSpec((tk, tn), lambda i, j, k: (k, j)),
            pl.BlockSpec((1, tn), lambda i, j, k: (0, j)),
        ],
        out_specs=pl.BlockSpec((tm, tn), lambda i, j, k: (i, j)),
        scratch_shapes=[pltpu.VMEM((tm, tn), jnp.float32)],
        compiler_params=pltpu.CompilerParams(
            dimension_semantics=("parallel", "parallel", "arbitrary"),
            vmem_limit_bytes=vmem_limit,
        ),
    )(x_padded, w_p, b_p)


# ---------------------------------------------------------------------------
# MLP wrapper (mirrors the PyTorch module, eval mode)
# ---------------------------------------------------------------------------
class PallasMLP:

    def __init__(self, in_dim, hidden_dims, out_dim, dropout=0.5, key=None,
                 compute_dtype=jnp.bfloat16, block_rows=512):
        if key is None:
            key = jax.random.PRNGKey(0)
        dims = [in_dim] + list(hidden_dims) + [out_dim]
        self.dims = dims
        self.compute_dtype = compute_dtype
        self.block_rows = block_rows
        self.dropout = dropout          # eval mode: identity
        # TODO(synk): training-mode dropout not implemented (eval-only forward).

        # Generation-dependent VMEM budgets (v5e/v6e: 128 MiB; v7x: 64 MiB).
        self._vmem_limit = _vmem_limit_bytes()
        self._fused_budget = self._vmem_limit - 4 * _MIB

        # f32 master params, PyTorch nn.Linear default init.
        self.params = []
        for i in range(len(dims) - 1):
            fan_in, fan_out = dims[i], dims[i + 1]
            key, kw, kb = jax.random.split(key, 3)
            bound = 1.0 / (fan_in ** 0.5)
            w = jax.random.uniform(kw, (fan_in, fan_out), jnp.float32,
                                   minval=-bound, maxval=bound)
            b = jax.random.uniform(kb, (fan_out,), jnp.float32,
                                   minval=-bound, maxval=bound)
            self.params.append((w, b))

        # Pre-pad once to lane-dense (multiple-of-128) shapes; weights in bf16,
        # biases kept in f32 for the f32 epilogue.
        self.padded_dims = [_round_up(d, 128) for d in dims]
        self.padded_params = []
        for l, (w, b) in enumerate(self.params):
            wp = _pad2d(w, self.padded_dims[l],
                        self.padded_dims[l + 1]).astype(compute_dtype)
            bp = _pad2d(b.reshape(1, -1), 1,
                        self.padded_dims[l + 1]).astype(jnp.float32)
            self.padded_params.append((wp, bp))

    def _fused_resident_bytes(self, tm):
        total = 0
        for wp, bpar in self.padded_params:
            # Count weight/bias blocks 2x: the pipeliner may double-buffer
            # even constant-index blocks; this keeps us from blowing the
            # scoped VMEM limit and gives a clean fall back instead.
            total += 2 * (wp.size * jnp.dtype(wp.dtype).itemsize
                          + bpar.size * jnp.dtype(bpar.dtype).itemsize)
        act = jnp.dtype(self.compute_dtype).itemsize
        dmax = max(self.padded_dims)
        total += 2 * tm * self.padded_dims[0] * act     # x tile, dbl-buffered
        total += 2 * tm * self.padded_dims[-1] * 4      # out tile, dbl-buffered
        total += 3 * tm * dmax * 4                      # live intermediates
        return total

    def __call__(self, x, force_tiled=False):
        B = x.shape[0]
        num_layers = len(self.padded_params)

        if not force_tiled:
            tm = _row_tile(B, self.block_rows)
            while True:
                if self._fused_resident_bytes(tm) <= self._fused_budget:
                    # Fast path: whole MLP in one kernel, activations in VMEM.
                    return mlp_fused_forward(
                        x, self.padded_params, self.dims, self.padded_dims,
                        self.compute_dtype, tm=tm, vmem_limit=self._vmem_limit)
                if tm <= 16:
                    break
                tm = max(16, _round_up(tm // 2, 16))   # shrink rows, retry

        # Fallback: per-layer tiled matmul kernel (weights too big for VMEM).
        # Activations stay in their padded bf16 shape between layers; slice
        # back to [B, out_dim] only once at the end (padding is exact zeros
        # through Linear+ReLU so no per-layer slice/re-pad HBM round trips).
        tm = _row_tile(B, self.block_rows)
        bp_rows = _round_up(B, tm)
        h = _pad2d(x, bp_rows, self.padded_dims[0]).astype(self.compute_dtype)
        for l, (wp, bpar) in enumerate(self.padded_params):
            last = (l == num_layers - 1)
            h = pallas_linear_tiled(
                h, wp, bpar,
                apply_relu=not last,
                out_dtype=(jnp.float32 if last else self.compute_dtype),
                tm=tm, vmem_limit=self._vmem_limit)
            # eval-mode dropout == identity
        return h[:B, :self.dims[-1]]


def reference_forward(x, params, compute_dtype):
    """Pure-JAX reference with identical bf16-operand / f32-accumulate math."""
    h = x.astype(compute_dtype)
    n = len(params)
    for l, (w, b) in enumerate(params):
        y = jnp.dot(h, w.astype(compute_dtype),
                    preferred_element_type=jnp.float32) + b
        if l < n - 1:
            h = jnp.maximum(y, 0.0).astype(compute_dtype)
        else:
            h = y
    return h


if __name__ == "__main__":
    key = jax.random.PRNGKey(0)
    k_in, k_in2, k_params = jax.random.split(key, 3)

    batch, in_dim, hidden_dims, out_dim = 4, 16, [32, 32], 8
    x = jax.random.normal(k_in, (batch, in_dim), dtype=jnp.float32)

    mlp = PallasMLP(in_dim, hidden_dims, out_dim, dropout=0.5, key=k_params)

    # Main path: entire MLP fused into a single Pallas kernel.
    y = jax.block_until_ready(mlp(x))

    # Also exercise the tiled per-layer fallback path (used for huge layers).
    y_tiled = jax.block_until_ready(mlp(x, force_tiled=True))

    # Reference with matching precision semantics.
    ref = jax.block_until_ready(
        reference_forward(x, mlp.params, mlp.compute_dtype))

    assert y.shape == (batch, out_dim)
    assert y_tiled.shape == (batch, out_dim)
    assert jnp.allclose(y, ref, atol=1e-2, rtol=1e-2)
    assert jnp.allclose(y_tiled, ref, atol=1e-2, rtol=1e-2)

    # Exercise a multi-row-tile grid (>= 2 steps -> v7x megacore shardable).
    batch2 = 40
    x2 = jax.random.normal(k_in2, (batch2, in_dim), dtype=jnp.float32)
    y2 = jax.block_until_ready(mlp(x2))
    ref2 = jax.block_until_ready(
        reference_forward(x2, mlp.params, mlp.compute_dtype))
    assert y2.shape == (batch2, out_dim)
    assert jnp.allclose(y2, ref2, atol=1e-2, rtol=1e-2)

    print("KERNEL_OK")
</pallas_src>

<mosaic_0001>
module attributes {stable_mosaic.version = 11 : i64} {
  func.func @_mlp_fused_kernel(%arg0: i32, %arg1: memref<16x128xbf16, #tpu.memory_space<vmem>>, %arg2: memref<128x128xbf16, #tpu.memory_space<vmem>>, %arg3: memref<1x128xf32, #tpu.memory_space<vmem>>, %arg4: memref<128x128xbf16, #tpu.memory_space<vmem>>, %arg5: memref<1x128xf32, #tpu.memory_space<vmem>>, %arg6: memref<128x128xbf16, #tpu.memory_space<vmem>>, %arg7: memref<1x128xf32, #tpu.memory_space<vmem>>, %arg8: memref<16x128xf32, #tpu.memory_space<vmem>>) attributes {dimension_semantics = [#tpu.dimension_semantics<parallel>], iteration_bounds = array<i64: 1>, scalar_prefetch = 0 : i64, scratch_operands = 0 : i64, tpu.core_type = #tpu.core_type<tc>, window_params = [{transform_indices = @transform_0, window_bounds = array<i64: 16, 128>}, {pipeline_mode = #tpu.pipeline_mode<synchronous>, transform_indices = @transform_1, window_bounds = array<i64: 128, 128>}, {pipeline_mode = #tpu.pipeline_mode<synchronous>, transform_indices = @transform_2, window_bounds = array<i64: 1, 128>}, {pipeline_mode = #tpu.pipeline_mode<synchronous>, transform_indices = @transform_3, window_bounds = array<i64: 128, 128>}, {pipeline_mode = #tpu.pipeline_mode<synchronous>, transform_indices = @transform_4, window_bounds = array<i64: 1, 128>}, {pipeline_mode = #tpu.pipeline_mode<synchronous>, transform_indices = @transform_5, window_bounds = array<i64: 128, 128>}, {pipeline_mode = #tpu.pipeline_mode<synchronous>, transform_indices = @transform_6, window_bounds = array<i64: 1, 128>}, {transform_indices = @transform_7, window_bounds = array<i64: 16, 128>}]} {
    %c0 = arith.constant 0 : index
    %c0_0 = arith.constant 0 : index
    %0 = vector.load %arg1[%c0, %c0_0] : memref<16x128xbf16, #tpu.memory_space<vmem>>, vector<16x128xbf16>
    %c0_1 = arith.constant 0 : index
    %c0_2 = arith.constant 0 : index
    %1 = vector.load %arg2[%c0_1, %c0_2] : memref<128x128xbf16, #tpu.memory_space<vmem>>, vector<128x128xbf16>
    %cst = arith.constant dense<0.000000e+00> : vector<16x128xf32>
    %2 = tpu.matmul %0, %1, %cst {dimension_numbers = #tpu.dot_dimension_numbers<[1], [0], [0], [1], [0, 0, 1, 1], [], []>} : vector<16x128xbf16>, vector<128x128xbf16>, vector<16x128xf32> -> vector<16x128xf32>
    %c0_3 = arith.constant 0 : index
    %c0_4 = arith.constant 0 : index
    %3 = vector.load %arg3[%c0_3, %c0_4] : memref<1x128xf32, #tpu.memory_space<vmem>>, vector<1x128xf32>
    %4 = vector.broadcast %3 : vector<1x128xf32> to vector<16x128xf32>
    %5 = arith.addf %2, %4 : vector<16x128xf32>
    %cst_5 = arith.constant 0.000000e+00 : f32
    %6 = vector.broadcast %cst_5 : f32 to vector<16x128xf32>
    %7 = arith.maximumf %5, %6 : vector<16x128xf32>
    %8 = arith.truncf %7 : vector<16x128xf32> to vector<16x128xbf16>
    %c0_6 = arith.constant 0 : index
    %c0_7 = arith.constant 0 : index
    %9 = vector.load %arg4[%c0_6, %c0_7] : memref<128x128xbf16, #tpu.memory_space<vmem>>, vector<128x128xbf16>
    %cst_8 = arith.constant dense<0.000000e+00> : vector<16x128xf32>
    %10 = tpu.matmul %8, %9, %cst_8 {dimension_numbers = #tpu.dot_dimension_numbers<[1], [0], [0], [1], [0, 0, 1, 1], [], []>} : vector<16x128xbf16>, vector<128x128xbf16>, vector<16x128xf32> -> vector<16x128xf32>
    %c0_9 = arith.constant 0 : index
    %c0_10 = arith.constant 0 : index
    %11 = vector.load %arg5[%c0_9, %c0_10] : memref<1x128xf32, #tpu.memory_space<vmem>>, vector<1x128xf32>
    %12 = vector.broadcast %11 : vector<1x128xf32> to vector<16x128xf32>
    %13 = arith.addf %10, %12 : vector<16x128xf32>
    %cst_11 = arith.constant 0.000000e+00 : f32
    %14 = vector.broadcast %cst_11 : f32 to vector<16x128xf32>
    %15 = arith.maximumf %13, %14 : vector<16x128xf32>
    %16 = arith.truncf %15 : vector<16x128xf32> to vector<16x128xbf16>
    %c0_12 = arith.constant 0 : index
    %c0_13 = arith.constant 0 : index
    %17 = vector.load %arg6[%c0_12, %c0_13] : memref<128x128xbf16, #tpu.memory_space<vmem>>, vector<128x128xbf16>
    %cst_14 = arith.constant dense<0.000000e+00> : vector<16x128xf32>
    %18 = tpu.matmul %16, %17, %cst_14 {dimension_numbers = #tpu.dot_dimension_numbers<[1], [0], [0], [1], [0, 0, 1, 1], [], []>} : vector<16x128xbf16>, vector<128x128xbf16>, vector<16x128xf32> -> vector<16x128xf32>
    %c0_15 = arith.constant 0 : index
    %c0_16 = arith.constant 0 : index
    %19 = vector.load %arg7[%c0_15, %c0_16] : memref<1x128xf32, #tpu.memory_space<vmem>>, vector<1x128xf32>
    %20 = vector.broadcast %19 : vector<1x128xf32> to vector<16x128xf32>
    %21 = arith.addf %18, %20 : vector<16x128xf32>
    %c0_17 = arith.constant 0 : index
    %c0_18 = arith.constant 0 : index
    %22 = vector.load %arg8[%c0_17, %c0_18] : memref<16x128xf32, #tpu.memory_space<vmem>>, vector<16x128xf32>
    tpu.vector_store %arg8[%c0_17, %c0_18], %21 {strides = array<i32>} : memref<16x128xf32, #tpu.memory_space<vmem>>, vector<16x128xf32>,
    return
  }
  func.func @transform_0(%arg0: i32) -> (i32, i32) {
    %c0_i32 = arith.constant 0 : i32
    %c0_i32_0 = arith.constant 0 : i32
    return %arg0, %c0_i32 : i32, i32
  }
  func.func @transform_1(%arg0: i32) -> (i32, i32) {
    %c0_i32 = arith.constant 0 : i32
    %c0_i32_0 = arith.constant 0 : i32
    %c0_i32_1 = arith.constant 0 : i32
    return %c0_i32, %c0_i32_0 : i32, i32
  }
  func.func @transform_2(%arg0: i32) -> (i32, i32) {
    %c0_i32 = arith.constant 0 : i32
    %c0_i32_0 = arith.constant 0 : i32
    %c0_i32_1 = arith.constant 0 : i32
    return %c0_i32, %c0_i32_0 : i32, i32
  }
  func.func @transform_3(%arg0: i32) -> (i32, i32) {
    %c0_i32 = arith.constant 0 : i32
    %c0_i32_0 = arith.constant 0 : i32
    %c0_i32_1 = arith.constant 0 : i32
    return %c0_i32, %c0_i32_0 : i32, i32
  }
  func.func @transform_4(%arg0: i32) -> (i32, i32) {
    %c0_i32 = arith.constant 0 : i32
    %c0_i32_0 = arith.constant 0 : i32
    %c0_i32_1 = arith.constant 0 : i32
    return %c0_i32, %c0_i32_0 : i32, i32
  }
  func.func @transform_5(%arg0: i32) -> (i32, i32) {
    %c0_i32 = arith.constant 0 : i32
    %c0_i32_0 = arith.constant 0 : i32
    %c0_i32_1 = arith.constant 0 : i32
    return %c0_i32, %c0_i32_0 : i32, i32
  }
  func.func @transform_6(%arg0: i32) -> (i32, i32) {
    %c0_i32 = arith.constant 0 : i32
    %c0_i32_0 = arith.constant 0 : i32
    %c0_i32_1 = arith.constant 0 : i32
    return %c0_i32, %c0_i32_0 : i32, i32
  }
  func.func @transform_7(%arg0: i32) -> (i32, i32) {
    %c0_i32 = arith.constant 0 : i32
    %c0_i32_0 = arith.constant 0 : i32
    return %arg0, %c0_i32 : i32, i32
  }
}

</mosaic_0001>

<bundles_post_ra>
// kernel: tpu_custom_call.1
= control target key start
LH: loop header
LB: loop body
LE: loop exit
PB: predicated region body
PF: predicated region fallthrough
CT: control target
= control target key end

     0   :  { %12 = vsyncpa [#allocation3], 0  ;;  %s711_s0 = inlined_call_operand.hbm [shape: bf16[16,128], index: 0, kind: input, shape index: {}]   ;;  %s712_s1 = inlined_call_operand.hbm [shape: bf16[128,128], index: 1, kind: input, shape index: {}]   ;;  %s713_s2 = inlined_call_operand.vmem [shape: f32[1,128], index: 2, kind: input, shape index: {}]   ;;  %s714_s3 = inlined_call_operand.hbm [shape: bf16[128,128], index: 3, kind: input, shape index: {}]   ;;  %s715_s4 = inlined_call_operand.vmem [shape: f32[1,128], index: 4, kind: input, shape index: {}]   ;;  %s716_s5 = inlined_call_operand.hbm [shape: bf16[128,128], index: 5, kind: input, shape index: {}]   ;;  %s717_s6 = inlined_call_operand.vmem [shape: f32[1,128], index: 6, kind: input, shape index: {}]   ;;  %s718_s7 = inlined_call_operand.hbm [shape: f32[16,128], index: 7, kind: output, shape index: {}]  }
   0x1   :  { %13 = vsyncpa [#allocation6], 0 }
   0x2   :  { %14 = vsyncpa [#allocation9], 0 }
   0x3   :  { %15 = vsyncpa [#allocation4], 0  ;;  %s33_s26 = sshll.u32 %s712_s1, 4  ;;  %s638_s27 = smov [#allocation5]   ;;  %s34_s26 = int_to_ptr.hbm [resolvable:$true] %s33_s26 }
   0x4   :  { %s35_s28 = sshll.u32 %s638_s27, 4  ;;  %s20_s8 = sshll.u32 %s711_s0, 4  ;;  %s36_s28 = int_to_ptr.vmem [resolvable:$true] %s35_s28  ;;  %s21_s8 = int_to_ptr.hbm [resolvable:$true] %s20_s8 }
   0x5   :  { %s639_s9 = smov 64   ;;  %s640_s10 = smov 4  }
   0x6   :  { %41 = dma.hbm_to_vmem [thread:$0]  %s34_s26, 1024, %s36_s28, [#allocation6], %s639_s9, %s639_s9, %s640_s10  }
   0x7   :  { %s641_s11 = smov [#allocation2]   ;;  %s48_s15 = sshll.u32 %s714_s3, 4  ;;  %s49_s15 = int_to_ptr.hbm [resolvable:$true] %s48_s15 }
   0x8   :  { %s22_s12 = sshll.u32 %s641_s11, 4  ;;  %s63_s17 = sshll.u32 %s716_s5, 4  ;;  %s23_s12 = int_to_ptr.vmem [resolvable:$true] %s22_s12  ;;  %s64_s17 = int_to_ptr.hbm [resolvable:$true] %s63_s17 }
   0x9   :  { %28 = dma.hbm_to_vmem [thread:$0]  %s21_s8, 128, %s23_s12, [#allocation3], %s639_s9, %s639_s9, %s640_s10  }
   0xa   :  { %s642_s18 = smov [#allocation7]   ;;  %s643_s0 = smov [#allocation8]  }
   0xb   :  { %s50_s19 = sshll.u32 %s642_s18, 4  ;;  %s65_s20 = sshll.u32 %s643_s0, 4  ;;  %s51_s19 = int_to_ptr.vmem [resolvable:$true] %s50_s19  ;;  %s66_s20 = int_to_ptr.vmem [resolvable:$true] %s65_s20 }
   0xc   :  { %56 = dma.hbm_to_vmem [thread:$0]  %s49_s15, 1024, %s51_s19, [#allocation6], %s639_s9, %s639_s9, %s640_s10  }
   0xd   :  { %71 = dma.hbm_to_vmem [thread:$0]  %s64_s17, 1024, %s66_s20, [#allocation9], %s639_s9, %s639_s9, %s640_s10  }
   0xe   :  { %630 = dma.done.wait [#allocation3], 128  }
   0xf   :  { %631 = vsyncadd [#allocation3], 4294967168 }
  0x10   :  { %632 = dma.done.wait [#allocation6], 2048  }
  0x11   :  { %633 = vsyncadd [#allocation6], 4294965248 }
  0x12   :  { %634 = dma.done.wait [#allocation9], 1024  }
  0x13   :  { %635 = vsyncadd [#allocation9], 4294966272  ;;  %v481_v0 = vld [vmem:[#allocation5 + $0x38] sm:$0xff]  ;;  %v480_v1 = vld [vmem:[#allocation5 + $0x30] sm:$0xff]  ;;  %s644_s24 = smov [#allocation10]   ;;  %s645_s28 = smov 128  }
  0x14   :  { %166 = vmatpush.bf16.msra.mxu0 %v481_v0  ;;  %v489_v2 = vld [vmem:[#allocation7 + $0x38] sm:$0xff]  ;;  %v488_v3 = vld [vmem:[#allocation7 + $0x30] sm:$0xff]  ;;  %v479_v4 = vld [vmem:[#allocation5 + $0x28] sm:$0xff]  ;;  %s356_s25 = sshll.u32 %s644_s24, 4  ;;  %s646_s29 = smov 8   ;;  %s357_s25 = int_to_ptr.vmem [resolvable:$true] %s356_s25 }
  0x15   :  { %251 = vmatpush.bf16.msra.mxu1 %v489_v2  ;;  %v487_v5 = vld [vmem:[#allocation7 + $0x28] sm:$0xff]  ;;  %v478_v6 = vld [vmem:[#allocation5 + $0x20] sm:$0xff]  ;;  %v477_v8 = vld [vmem:[#allocation5 + $0x18] sm:$0xff] }
  0x16   :  { %v486_v7 = vld [vmem:[#allocation7 + $0x20] sm:$0xff]  ;;  %v476_v9 = vld [vmem:[#allocation5 + $0x10] sm:$0xff]  ;;  %v475_v10 = vld [vmem:[#allocation5 + $0x8] sm:$0xff] }
  0x17   :  { %v474_v11 = vld [vmem:[#allocation5] sm:$0xff]  ;;  %v473_v12 = vld [vmem:[#allocation2] sm:$0xff]  ;;  %v484_v14 = vld [vmem:[#allocation7 + $0x10] sm:$0xff] }
  0x18   :  { %167 = vmatpush.bf16.msra.mxu0 %v480_v1  ;;  %v485_v13 = vld [vmem:[#allocation7 + $0x18] sm:$0xff]  ;;  %v483_v15 = vld [vmem:[#allocation7 + $0x8] sm:$0xff]  ;;  %v482_v16 = vld [vmem:[#allocation7] sm:$0xff] }
  0x19   :  { %252 = vmatpush.bf16.msra.mxu1 %v488_v3  ;;  %v497_v17 = vld [vmem:[#allocation8 + $0x38] sm:$0xff]  ;;  %v496_v18 = vld [vmem:[#allocation8 + $0x30] sm:$0xff]  ;;  %v495_v19 = vld [vmem:[#allocation8 + $0x28] sm:$0xff] }
  0x1a   :  { %336 = vmatpush.bf16.msra.mxu2 %v497_v17  ;;  %v494_v20 = vld [vmem:[#allocation8 + $0x20] sm:$0xff]  ;;  %v507_v22 = vld [vmem:[%s713_s2] ss:$0 sm:$0xff]  ;;  %v492_v30 = vld [vmem:[#allocation8 + $0x10] sm:$0xff] }
  0x1b   :  { %v493_v29 = vld [vmem:[#allocation8 + $0x18] sm:$0xff]  ;;  %v491_v31 = vld [vmem:[#allocation8 + $0x8] sm:$0xff]  ;;  %v490_v32 = vld [vmem:[#allocation8] sm:$0xff] }
  0x1c   :  { %168 = vmatpush.bf16.msra.mxu0 %v479_v4  ;;  %v508_v34 = vld [vmem:[%s715_s4] ss:$0 sm:$0xff]  ;;  %s358_s4 = sshll.u32 %s718_s7, 4  ;;  %s359_s4 = int_to_ptr.hbm [resolvable:$true] %s358_s4 }
  0x1d   :  { %253 = vmatpush.bf16.msra.mxu1 %v487_v5  ;;  %v509_v41 = vld [vmem:[%s717_s6] ss:$0 sm:$0xff] }
  0x1e   :  { %337 = vmatpush.bf16.msra.mxu2 %v496_v18 }
  0x20   :  { %169 = vmatpush.bf16.msra.mxu0 %v478_v6 }
  0x21   :  { %254 = vmatpush.bf16.msra.mxu1 %v486_v7 }
  0x22   :  { %338 = vmatpush.bf16.msra.mxu2 %v495_v19 }
  0x24   :  { %170 = vmatpush.bf16.msra.mxu0 %v477_v8 }
  0x25   :  { %255 = vmatpush.bf16.msra.mxu1 %v485_v13 }
  0x26   :  { %339 = vmatpush.bf16.msra.mxu2 %v494_v20 }
  0x28   :  { %171 = vmatpush.bf16.msra.mxu0 %v476_v9 }
  0x29   :  { %256 = vmatpush.bf16.msra.mxu1 %v484_v14 }
  0x2a   :  { %340 = vmatpush.bf16.msra.mxu2 %v493_v29 }
  0x2c   :  { %172 = vmatpush.bf16.msra.mxu0 %v475_v10 }
  0x2d   :  { %257 = vmatpush.bf16.msra.mxu1 %v483_v15 }
  0x2e   :  { %341 = vmatpush.bf16.msra.mxu2 %v492_v30 }
  0x30   :  { %173 = vmatpush.bf16.msra.mxu0 %v474_v11 }
  0x31   :  { %258 = vmatpush.bf16.msra.mxu1 %v482_v16 }
  0x32   :  { %342 = vmatpush.bf16.msra.mxu2 %v491_v31 }
  0x33   :  { %174 = vmatmul.bf16.vlgmr.msra.gmra.mxu0 %v473_v12 }
  0x36   :  { %343 = vmatpush.bf16.msra.mxu2 %v490_v32 }
  0xb0   :  { %v175_v21 = vpop.f32.mrf.mxu0 }
  0xb1   :  { %v176_v23 = vadd.f32 %v507_v22, %v175_v21 }
  0xb3   :  { %v180_v26 = vmax.f32 %v176_v23, 0.0 }
  0xb8   :  { %v177_v24 = vpop.f32.mrf.mxu0 }
  0xb9   :  { %v178_v25 = vadd.f32 %v507_v22, %v177_v24 }
  0xbb   :  { %v181_v27 = vmax.f32 %v178_v25, 0.0 }
  0xbd   :  { %v182_v28 = vpack.c.bf16 %v181_v27, %v180_v26 }
  0xbf   :  { %259 = vmatmul.bf16.vlgmr.msra.gmra.mxu1 %v182_v28 }
 0x13c   :  { %v260_v33 = vpop.f32.mrf.mxu1 }
 0x13d   :  { %v261_v35 = vadd.f32 %v508_v34, %v260_v33 }
 0x13f   :  { %v265_v38 = vmax.f32 %v261_v35, 0.0 }
 0x144   :  { %v262_v36 = vpop.f32.mrf.mxu1 }
 0x145   :  { %v263_v37 = vadd.f32 %v508_v34, %v262_v36 }
 0x147   :  { %v266_v39 = vmax.f32 %v263_v37, 0.0 }
 0x149   :  { %v267_v40 = vpack.c.bf16 %v266_v39, %v265_v38 }
 0x14b   :  { %344 = vmatmul.bf16.vlgmr.msra.gmra.mxu2 %v267_v40 }
 0x1ce   :  { %v345_v42 = vpop.f32.mrf.mxu2 }
 0x1cf   :  { %v346_v43 = vadd.f32 %v509_v41, %v345_v42 }
 0x1d1   :  { %350 = vst [vmem:[#allocation10] sm:$0xff] %v346_v43 }
 0x1d6   :  { %v347_v44 = vpop.f32.mrf.mxu2 }
 0x1d7   :  { %v348_v45 = vadd.f32 %v509_v41, %v347_v44 }
 0x1d9   :  { %351 = vst [vmem:[#allocation10 + $0x8] sm:$0xff] %v348_v45 }
 0x1da   :  { %364 = dma.vmem_to_hbm [thread:$0]  %s357_s25, 256, %s359_s4, [#allocation4], %s645_s28, %s645_s28, %s646_s29  }
 0x1db   :  { %636 = dma.done.wait [#allocation4], 256  }
 0x1dc   :  { %637 = vsyncadd [#allocation4], 4294967040 }
 0x1dd   :  { %369 = vsyncpa [#allocation3], 1 }
 0x1de   :  { %370 = vsyncpa [#allocation6], 1 }
 0x1df   :  { %371 = vsyncpa [#allocation9], 1 }
 0x1e0   :  { %372 = vsyncpa [#allocation4], 1 }

</bundles_post_ra>
